<compile_context>
chip_gen: v6e
topology: v6e:2x2x1
jax: 0.10.0
libtpu: 0.0.40
codegen_flags: <defaults>
</compile_context>

<pallas_src>
import functools

import jax
import jax.numpy as jnp
from jax.experimental import pallas as pl
from jax.experimental.pallas import tpu as pltpu


def _tds_kernel(x_ref, w_ref, b_ref, g_ref, beta_ref, o_ref, *, kernel_width):
    # x_ref:    (T_in, N, F)  full input, resident in VMEM (constant index map -> fetched once)
    # w_ref:    (K*F, F)      bf16 stacked block-diagonal conv weights
    # b_ref:    (1, F)        f32 expanded conv bias
    # g_ref:    (1, F)        f32 LayerNorm gamma
    # beta_ref: (1, F)        f32 LayerNorm beta
    # o_ref:    (tq, N, F)    output tile along time
    K = kernel_width
    tq, N, F = o_ref.shape
    t0 = pl.program_id(0) * tq            # first output time index of this tile

    w = w_ref[...]                        # keep bf16 for the MXU
    b = b_ref[...]                        # (1, F) f32
    g = g_ref[...]
    bt = beta_ref[...]
    inv_f = 1.0 / float(F)

    # N is small and static -> unrolled; every matmul is a clean 2-D MXU op.
    for n in range(N):
        # K shifted time windows of this batch element, each (tq, F), kept in f32 for the epilogue.
        taps = [
            x_ref[pl.ds(t0 + k, tq), n:n + 1, :][:, 0, :].astype(jnp.float32)
            for k in range(K)
        ]

        # Fused conv: one (tq, K*F) x (K*F, F) matmul, bf16 operands, f32 accumulation.
        xcat = jnp.concatenate([tap.astype(jnp.bfloat16) for tap in taps], axis=-1)
        acc = jnp.dot(xcat, w, preferred_element_type=jnp.float32)       # (tq, F) f32

        # Bias + ReLU + residual (inputs[-T_out:] is exactly the k = K-1 window), all f32.
        y = jnp.maximum(acc + b, 0.0) + taps[K - 1]

        # One-pass LayerNorm over F: var = E[y^2] - mean^2, biased, eps = 1e-5 (as nn.LayerNorm).
        s1 = jnp.sum(y, axis=-1, keepdims=True)
        s2 = jnp.sum(y * y, axis=-1, keepdims=True)
        mean = s1 * inv_f
        var = s2 * inv_f - mean * mean
        out = (y - mean) * jax.lax.rsqrt(var + 1e-5) * g + bt

        o_ref[:, n:n + 1, :] = out[:, None, :].astype(o_ref.dtype)


def tds_conv2d_block(x_tnf, conv_w, conv_b, gamma, beta, *, channels, width, kernel_width):
    """x_tnf: (T_in, N, F) with F = channels * width. Returns (T_out, N, F)."""
    T_in, N, F = x_tnf.shape
    assert F == channels * width
    K = kernel_width
    T_out = T_in - K + 1
    assert T_out >= 1

    # Stacked block-diagonal conv weights, bf16:
    #   w_stack[k*F + c_in*width + w, c_out*width + w] = conv_w[c_out, c_in, 0, k]
    eye_w = jnp.eye(width, dtype=jnp.float32)
    wbig = jnp.einsum('ock,wv->kcwov', conv_w[:, :, 0, :].astype(jnp.float32), eye_w)
    w_stack = wbig.reshape(K * F, F).astype(jnp.bfloat16)

    bias_full = jnp.repeat(conv_b.astype(jnp.float32), width).reshape(1, F)
    gamma2 = gamma.reshape(1, F).astype(jnp.float32)
    beta2 = beta.reshape(1, F).astype(jnp.float32)

    # Time-axis grid: 2 "parallel" steps when T_out is even (keeps both v7x TensorCores busy);
    # each step processes the full batch -> coarse blocks, no wrapper transposes anywhere.
    nt = 2 if (T_out % 2 == 0 and T_out >= 2) else 1
    tq = T_out // nt

    kernel = functools.partial(_tds_kernel, kernel_width=K)
    out = pl.pallas_call(
        kernel,
        out_shape=jax.ShapeDtypeStruct((T_out, N, F), x_tnf.dtype),
        grid=(nt,),
        in_specs=[
            # Full input resident in VMEM, fetched once (constant index map).
            # TODO(synk): for very long T, tile x along time with halos (pl.Element / manual DMA).
            pl.BlockSpec((T_in, N, F), lambda i: (0, 0, 0)),
            pl.BlockSpec((K * F, F), lambda i: (0, 0)),   # bf16 conv weights (constant block)
            pl.BlockSpec((1, F), lambda i: (0, 0)),       # conv bias
            pl.BlockSpec((1, F), lambda i: (0, 0)),       # LN gamma
            pl.BlockSpec((1, F), lambda i: (0, 0)),       # LN beta
        ],
        out_specs=pl.BlockSpec((tq, N, F), lambda i: (i, 0, 0)),
        compiler_params=pltpu.CompilerParams(
            dimension_semantics=("parallel",),
            vmem_limit_bytes=32 * 1024 * 1024,
        ),
    )(x_tnf, w_stack, bias_full, gamma2, beta2)
    return out


def _reference(x, conv_w, conv_b, gamma, beta, channels, width, K):
    """Pure-JAX f32 mirror of the PyTorch forward, for verification."""
    T_in, N, F = x.shape
    xr = jnp.transpose(x, (1, 2, 0)).reshape(N, channels, width, T_in)
    T_out = T_in - K + 1
    out = jnp.zeros((N, channels, width, T_out), jnp.float32)
    for k in range(K):
        out = out + jnp.einsum('ncwt,oc->nowt', xr[..., k:k + T_out], conv_w[:, :, 0, k])
    out = out + conv_b[None, :, None, None]
    out = jnp.maximum(out, 0.0)
    out = out.reshape(N, F, T_out)
    out = jnp.moveaxis(out, -1, 0)              # (T_out, N, F)
    y = out + x[-T_out:]
    mean = jnp.mean(y, axis=-1, keepdims=True)
    var = jnp.mean((y - mean) ** 2, axis=-1, keepdims=True)
    return (y - mean) / jnp.sqrt(var + 1e-5) * gamma + beta


if __name__ == "__main__":
    channels, width, kernel_width = 4, 8, 3
    F = channels * width                         # 32
    T_in, N = 16, 2

    key = jax.random.PRNGKey(0)
    k1, k2, k3 = jax.random.split(key, 3)
    x = jax.random.normal(k1, (T_in, N, F), dtype=jnp.float32)
    # Deterministic parameter init (shapes per nn.Conv2d / nn.LayerNorm in __init__).
    conv_w = 0.1 * jax.random.normal(k2, (channels, channels, 1, kernel_width), dtype=jnp.float32)
    conv_b = 0.1 * jax.random.normal(k3, (channels,), dtype=jnp.float32)
    gamma = jnp.ones((F,), dtype=jnp.float32)    # LayerNorm default weight
    beta = jnp.zeros((F,), dtype=jnp.float32)    # LayerNorm default bias

    out = tds_conv2d_block(
        x, conv_w, conv_b, gamma, beta,
        channels=channels, width=width, kernel_width=kernel_width)
    out = jax.block_until_ready(out)

    ref = _reference(x, conv_w, conv_b, gamma, beta, channels, width, kernel_width)
    assert out.shape == (T_in - kernel_width + 1, N, F)
    # bf16 MXU operands (f32 accumulation + f32 epilogue) -> tolerance looser than pure f32.
    assert jnp.allclose(out, ref, atol=2e-2, rtol=2e-2), float(jnp.max(jnp.abs(out - ref)))

    print("KERNEL_OK")
</pallas_src>

<mosaic_0001>
module attributes {stable_mosaic.version = 11 : i64} {
  func.func @_tds_kernel(%arg0: i32, %arg1: memref<16x2x32xf32, #tpu.memory_space<vmem>>, %arg2: memref<96x32xbf16, #tpu.memory_space<vmem>>, %arg3: memref<1x32xf32, #tpu.memory_space<vmem>>, %arg4: memref<1x32xf32, #tpu.memory_space<vmem>>, %arg5: memref<1x32xf32, #tpu.memory_space<vmem>>, %arg6: memref<7x2x32xf32, #tpu.memory_space<vmem>>) attributes {dimension_semantics = [#tpu.dimension_semantics<parallel>], iteration_bounds = array<i64: 2>, scalar_prefetch = 0 : i64, scratch_operands = 0 : i64, tpu.core_type = #tpu.core_type<tc>, window_params = [{pipeline_mode = #tpu.pipeline_mode<synchronous>, transform_indices = @transform_0, window_bounds = array<i64: 16, 2, 32>}, {pipeline_mode = #tpu.pipeline_mode<synchronous>, transform_indices = @transform_1, window_bounds = array<i64: 96, 32>}, {pipeline_mode = #tpu.pipeline_mode<synchronous>, transform_indices = @transform_2, window_bounds = array<i64: 1, 32>}, {pipeline_mode = #tpu.pipeline_mode<synchronous>, transform_indices = @transform_3, window_bounds = array<i64: 1, 32>}, {pipeline_mode = #tpu.pipeline_mode<synchronous>, transform_indices = @transform_4, window_bounds = array<i64: 1, 32>}, {transform_indices = @transform_5, window_bounds = array<i64: 7, 2, 32>}]} {
    %c7_i32 = arith.constant 7 : i32
    %0 = arith.muli %arg0, %c7_i32 : i32
    %c0 = arith.constant 0 : index
    %c0_0 = arith.constant 0 : index
    %1 = vector.load %arg2[%c0, %c0_0] : memref<96x32xbf16, #tpu.memory_space<vmem>>, vector<96x32xbf16>
    %c0_1 = arith.constant 0 : index
    %c0_2 = arith.constant 0 : index
    %2 = vector.load %arg3[%c0_1, %c0_2] : memref<1x32xf32, #tpu.memory_space<vmem>>, vector<1x32xf32>
    %c0_3 = arith.constant 0 : index
    %c0_4 = arith.constant 0 : index
    %3 = vector.load %arg4[%c0_3, %c0_4] : memref<1x32xf32, #tpu.memory_space<vmem>>, vector<1x32xf32>
    %c0_5 = arith.constant 0 : index
    %c0_6 = arith.constant 0 : index
    %4 = vector.load %arg5[%c0_5, %c0_6] : memref<1x32xf32, #tpu.memory_space<vmem>>, vector<1x32xf32>
    %c0_i32 = arith.constant 0 : i32
    %5 = arith.addi %0, %c0_i32 : i32
    %6 = arith.index_cast %5 : i32 to index
    %c0_7 = arith.constant 0 : index
    %c0_8 = arith.constant 0 : index
    %7 = vector.load %arg1[%6, %c0_7, %c0_8] : memref<16x2x32xf32, #tpu.memory_space<vmem>>, vector<7x1x32xf32>
    %8 = vector.shape_cast %7 : vector<7x1x32xf32> to vector<7x32xf32>
    %c1_i32 = arith.constant 1 : i32
    %9 = arith.addi %0, %c1_i32 : i32
    %10 = arith.index_cast %9 : i32 to index
    %c0_9 = arith.constant 0 : index
    %c0_10 = arith.constant 0 : index
    %11 = vector.load %arg1[%10, %c0_9, %c0_10] : memref<16x2x32xf32, #tpu.memory_space<vmem>>, vector<7x1x32xf32>
    %12 = vector.shape_cast %11 : vector<7x1x32xf32> to vector<7x32xf32>
    %c2_i32 = arith.constant 2 : i32
    %13 = arith.addi %0, %c2_i32 : i32
    %14 = arith.index_cast %13 : i32 to index
    %c0_11 = arith.constant 0 : index
    %c0_12 = arith.constant 0 : index
    %15 = vector.load %arg1[%14, %c0_11, %c0_12] : memref<16x2x32xf32, #tpu.memory_space<vmem>>, vector<7x1x32xf32>
    %16 = vector.shape_cast %15 : vector<7x1x32xf32> to vector<7x32xf32>
    %17 = arith.truncf %8 : vector<7x32xf32> to vector<7x32xbf16>
    %18 = arith.truncf %12 : vector<7x32xf32> to vector<7x32xbf16>
    %19 = arith.truncf %16 : vector<7x32xf32> to vector<7x32xbf16>
    %20 = tpu.concatenate %17, %18, %19 in 1 : vector<7x32xbf16>, vector<7x32xbf16>, vector<7x32xbf16> -> vector<7x96xbf16>
    %cst = arith.constant dense<0.000000e+00> : vector<7x32xf32>
    %21 = tpu.matmul %20, %1, %cst {dimension_numbers = #tpu.dot_dimension_numbers<[1], [0], [0], [1], [0, 0, 1, 1], [], []>} : vector<7x96xbf16>, vector<96x32xbf16>, vector<7x32xf32> -> vector<7x32xf32>
    %22 = vector.broadcast %2 : vector<1x32xf32> to vector<7x32xf32>
    %23 = arith.addf %21, %22 : vector<7x32xf32>
    %cst_13 = arith.constant 0.000000e+00 : f32
    %24 = vector.broadcast %cst_13 : f32 to vector<7x32xf32>
    %25 = arith.maximumf %23, %24 : vector<7x32xf32>
    %26 = arith.addf %25, %16 : vector<7x32xf32>
    %cst_14 = arith.constant dense<0.000000e+00> : vector<7xf32>
    %27 = vector.multi_reduction <add>, %26, %cst_14 [1] : vector<7x32xf32> to vector<7xf32>
    %28 = vector.shape_cast %27 : vector<7xf32> to vector<7x1xf32>
    %29 = arith.mulf %26, %26 : vector<7x32xf32>
    %cst_15 = arith.constant dense<0.000000e+00> : vector<7xf32>
    %30 = vector.multi_reduction <add>, %29, %cst_15 [1] : vector<7x32xf32> to vector<7xf32>
    %31 = vector.shape_cast %30 : vector<7xf32> to vector<7x1xf32>
    %cst_16 = arith.constant 3.125000e-02 : f32
    %32 = vector.broadcast %cst_16 : f32 to vector<7x1xf32>
    %33 = arith.mulf %28, %32 : vector<7x1xf32>
    %cst_17 = arith.constant 3.125000e-02 : f32
    %34 = vector.broadcast %cst_17 : f32 to vector<7x1xf32>
    %35 = arith.mulf %31, %34 : vector<7x1xf32>
    %36 = arith.mulf %33, %33 : vector<7x1xf32>
    %37 = arith.subf %35, %36 : vector<7x1xf32>
    %38 = vector.broadcast %33 : vector<7x1xf32> to vector<7x32xf32>
    %39 = arith.subf %26, %38 : vector<7x32xf32>
    %cst_18 = arith.constant 9.99999974E-6 : f32
    %40 = vector.broadcast %cst_18 : f32 to vector<7x1xf32>
    %41 = arith.addf %37, %40 : vector<7x1xf32>
    %42 = math.rsqrt %41 : vector<7x1xf32>
    %43 = vector.broadcast %42 : vector<7x1xf32> to vector<7x32xf32>
    %44 = arith.mulf %39, %43 : vector<7x32xf32>
    %45 = vector.broadcast %3 : vector<1x32xf32> to vector<7x32xf32>
    %46 = arith.mulf %44, %45 : vector<7x32xf32>
    %47 = vector.broadcast %4 : vector<1x32xf32> to vector<7x32xf32>
    %48 = arith.addf %46, %47 : vector<7x32xf32>
    %49 = vector.shape_cast %48 : vector<7x32xf32> to vector<7x1x32xf32>
    %c0_19 = arith.constant 0 : index
    %c0_20 = arith.constant 0 : index
    %c0_21 = arith.constant 0 : index
    %50 = vector.load %arg6[%c0_19, %c0_20, %c0_21] : memref<7x2x32xf32, #tpu.memory_space<vmem>>, vector<7x1x32xf32>
    tpu.vector_store %arg6[%c0_19, %c0_20, %c0_21], %49 {strides = array<i32>} : memref<7x2x32xf32, #tpu.memory_space<vmem>>, vector<7x1x32xf32>,
    %c0_i32_22 = arith.constant 0 : i32
    %51 = arith.addi %0, %c0_i32_22 : i32
    %52 = arith.index_cast %51 : i32 to index
    %c1 = arith.constant 1 : index
    %c0_23 = arith.constant 0 : index
    %53 = vector.load %arg1[%52, %c1, %c0_23] : memref<16x2x32xf32, #tpu.memory_space<vmem>>, vector<7x1x32xf32>
    %54 = vector.shape_cast %53 : vector<7x1x32xf32> to vector<7x32xf32>
    %c1_i32_24 = arith.constant 1 : i32
    %55 = arith.addi %0, %c1_i32_24 : i32
    %56 = arith.index_cast %55 : i32 to index
    %c1_25 = arith.constant 1 : index
    %c0_26 = arith.constant 0 : index
    %57 = vector.load %arg1[%56, %c1_25, %c0_26] : memref<16x2x32xf32, #tpu.memory_space<vmem>>, vector<7x1x32xf32>
    %58 = vector.shape_cast %57 : vector<7x1x32xf32> to vector<7x32xf32>
    %c2_i32_27 = arith.constant 2 : i32
    %59 = arith.addi %0, %c2_i32_27 : i32
    %60 = arith.index_cast %59 : i32 to index
    %c1_28 = arith.constant 1 : index
    %c0_29 = arith.constant 0 : index
    %61 = vector.load %arg1[%60, %c1_28, %c0_29] : memref<16x2x32xf32, #tpu.memory_space<vmem>>, vector<7x1x32xf32>
    %62 = vector.shape_cast %61 : vector<7x1x32xf32> to vector<7x32xf32>
    %63 = arith.truncf %54 : vector<7x32xf32> to vector<7x32xbf16>
    %64 = arith.truncf %58 : vector<7x32xf32> to vector<7x32xbf16>
    %65 = arith.truncf %62 : vector<7x32xf32> to vector<7x32xbf16>
    %66 = tpu.concatenate %63, %64, %65 in 1 : vector<7x32xbf16>, vector<7x32xbf16>, vector<7x32xbf16> -> vector<7x96xbf16>
    %cst_30 = arith.constant dense<0.000000e+00> : vector<7x32xf32>
    %67 = tpu.matmul %66, %1, %cst_30 {dimension_numbers = #tpu.dot_dimension_numbers<[1], [0], [0], [1], [0, 0, 1, 1], [], []>} : vector<7x96xbf16>, vector<96x32xbf16>, vector<7x32xf32> -> vector<7x32xf32>
    %68 = vector.broadcast %2 : vector<1x32xf32> to vector<7x32xf32>
    %69 = arith.addf %67, %68 : vector<7x32xf32>
    %cst_31 = arith.constant 0.000000e+00 : f32
    %70 = vector.broadcast %cst_31 : f32 to vector<7x32xf32>
    %71 = arith.maximumf %69, %70 : vector<7x32xf32>
    %72 = arith.addf %71, %62 : vector<7x32xf32>
    %cst_32 = arith.constant dense<0.000000e+00> : vector<7xf32>
    %73 = vector.multi_reduction <add>, %72, %cst_32 [1] : vector<7x32xf32> to vector<7xf32>
    %74 = vector.shape_cast %73 : vector<7xf32> to vector<7x1xf32>
    %75 = arith.mulf %72, %72 : vector<7x32xf32>
    %cst_33 = arith.constant dense<0.000000e+00> : vector<7xf32>
    %76 = vector.multi_reduction <add>, %75, %cst_33 [1] : vector<7x32xf32> to vector<7xf32>
    %77 = vector.shape_cast %76 : vector<7xf32> to vector<7x1xf32>
    %cst_34 = arith.constant 3.125000e-02 : f32
    %78 = vector.broadcast %cst_34 : f32 to vector<7x1xf32>
    %79 = arith.mulf %74, %78 : vector<7x1xf32>
    %cst_35 = arith.constant 3.125000e-02 : f32
    %80 = vector.broadcast %cst_35 : f32 to vector<7x1xf32>
    %81 = arith.mulf %77, %80 : vector<7x1xf32>
    %82 = arith.mulf %79, %79 : vector<7x1xf32>
    %83 = arith.subf %81, %82 : vector<7x1xf32>
    %84 = vector.broadcast %79 : vector<7x1xf32> to vector<7x32xf32>
    %85 = arith.subf %72, %84 : vector<7x32xf32>
    %cst_36 = arith.constant 9.99999974E-6 : f32
    %86 = vector.broadcast %cst_36 : f32 to vector<7x1xf32>
    %87 = arith.addf %83, %86 : vector<7x1xf32>
    %88 = math.rsqrt %87 : vector<7x1xf32>
    %89 = vector.broadcast %88 : vector<7x1xf32> to vector<7x32xf32>
    %90 = arith.mulf %85, %89 : vector<7x32xf32>
    %91 = vector.broadcast %3 : vector<1x32xf32> to vector<7x32xf32>
    %92 = arith.mulf %90, %91 : vector<7x32xf32>
    %93 = vector.broadcast %4 : vector<1x32xf32> to vector<7x32xf32>
    %94 = arith.addf %92, %93 : vector<7x32xf32>
    %95 = vector.shape_cast %94 : vector<7x32xf32> to vector<7x1x32xf32>
    %c0_37 = arith.constant 0 : index
    %c1_38 = arith.constant 1 : index
    %c0_39 = arith.constant 0 : index
    %96 = vector.load %arg6[%c0_37, %c1_38, %c0_39] : memref<7x2x32xf32, #tpu.memory_space<vmem>>, vector<7x1x32xf32>
    tpu.vector_store %arg6[%c0_37, %c1_38, %c0_39], %95 {strides = array<i32>} : memref<7x2x32xf32, #tpu.memory_space<vmem>>, vector<7x1x32xf32>,
    return
  }
  func.func @transform_0(%arg0: i32) -> (i32, i32, i32) {
    %c0_i32 = arith.constant 0 : i32
    %c0_i32_0 = arith.constant 0 : i32
    %c0_i32_1 = arith.constant 0 : i32
    %c0_i32_2 = arith.constant 0 : i32
    return %c0_i32, %c0_i32_0, %c0_i32_1 : i32, i32, i32
  }
  func.func @transform_1(%arg0: i32) -> (i32, i32) {
    %c0_i32 = arith.constant 0 : i32
    %c0_i32_0 = arith.constant 0 : i32
    %c0_i32_1 = arith.constant 0 : i32
    return %c0_i32, %c0_i32_0 : i32, i32
  }
  func.func @transform_2(%arg0: i32) -> (i32, i32) {
    %c0_i32 = arith.constant 0 : i32
    %c0_i32_0 = arith.constant 0 : i32
    %c0_i32_1 = arith.constant 0 : i32
    return %c0_i32, %c0_i32_0 : i32, i32
  }
  func.func @transform_3(%arg0: i32) -> (i32, i32) {
    %c0_i32 = arith.constant 0 : i32
    %c0_i32_0 = arith.constant 0 : i32
    %c0_i32_1 = arith.constant 0 : i32
    return %c0_i32, %c0_i32_0 : i32, i32
  }
  func.func @transform_4(%arg0: i32) -> (i32, i32) {
    %c0_i32 = arith.constant 0 : i32
    %c0_i32_0 = arith.constant 0 : i32
    %c0_i32_1 = arith.constant 0 : i32
    return %c0_i32, %c0_i32_0 : i32, i32
  }
  func.func @transform_5(%arg0: i32) -> (i32, i32, i32) {
    %c0_i32 = arith.constant 0 : i32
    %c0_i32_0 = arith.constant 0 : i32
    %c0_i32_1 = arith.constant 0 : i32
    return %arg0, %c0_i32, %c0_i32_0 : i32, i32, i32
  }
}

</mosaic_0001>

<bundles_post_ra>
// kernel: tpu_custom_call.1
= control target key start
LH: loop header
LB: loop body
LE: loop exit
PB: predicated region body
PF: predicated region fallthrough
CT: control target
= control target key end

     0   :  { %10 = vsyncpa [#allocation3], 0  ;;  %s1521_s0 = inlined_call_operand.vmem [shape: f32[16,2,32], index: 0, kind: input, shape index: {}]   ;;  %s1522_s1 = inlined_call_operand.vmem [shape: bf16[96,32], index: 1, kind: input, shape index: {}]   ;;  %s1523_s2 = inlined_call_operand.vmem [shape: f32[1,32], index: 2, kind: input, shape index: {}]   ;;  %s1524_s3 = inlined_call_operand.vmem [shape: f32[1,32], index: 3, kind: input, shape index: {}]   ;;  %s1525_s4 = inlined_call_operand.vmem [shape: f32[1,32], index: 4, kind: input, shape index: {}]   ;;  %s1526_s5 = inlined_call_operand.hbm [shape: f32[14,2,32], index: 5, kind: output, shape index: {}]  }
   0x1   :  { %12 = vsyncpa [#allocation3 + $0x1], 0  ;;  %s1170_s18 = smov 0   ;;  %s1172_s19 = smov 0  }
   0x2   :  { %s1174_s20 = smov 0   ;;  %s1176_s21 = smov 0  }
   0x3 LB: > { %s1191_s22 = sadd.s32 4294967295, %s1131_s21   ;;  %s920_s23 = sadd.s32 4294967294, %s1131_s21   ;;  %s1131_s21 = sphi %s1176_s21, %s1532_s21   ;;  %s1127_s20 = sphi %s1174_s20, %s1531_s20   ;;  %s1123_s19 = sphi %s1172_s19, %s1530_s19   ;;  %s1119_s18 = sphi %s1170_s18, %s1529_s18  }
   0x4   : > { %s1195_s24 = sadd.s32 1, %s1131_s21   ;;  %s130_s25 = sadd.s32 1, %s1127_s20 }
   0x5   : > { %s127_s26 = ssub.s32 %s1131_s21, %s1195_s24  ;;  %p140_p0 = scmp.ne.s32.totalorder %s1127_s20, %s1123_s19 }
   0x6   : > { %p128_p1 = scmp.eq.s32.totalorder %s127_s26, 0  ;;  %p141_p2 = scmp.eq.s32.totalorder %s1191_s22, 1 }
   0x7   : > { %p146_p3 = scmp.ne.s32.totalorder %s1123_s19, %s1119_s18  ;;  %p147_p4 = scmp.eq.s32.totalorder %s920_s23, 1 }
   0x8   : > { %s1206_s27 = scalar_select %p128_p1, %s1127_s20, %s130_s25  }
   0x9   : > { %p1208_p5 = por %p141_p2, %p140_p0  ;;  %p1212_p6 = por %p147_p4, %p146_p3 }
   0xa   : > { %p922_p7 = scmp.ge.s32.totalorder %s1131_s21, 1  ;;  %p180_p8 = scmp.lt.s32.totalorder %s1131_s21, 3 }
   0xc   : > { %p181_p9 = pnand %p922_p7, %p180_p8 }
   0xd   : > { %s923_s30 = smul.u32 (!%p181_p9), 14, %s1191_s22  ;;  %s1134_s17 = smov (!%p181_p9), 32  }
   0xe   : > { %184 = sbr.rel (%p181_p9) target bundleno = 560 (0x230), region = 40  ;;  %s1135_s6 = smov (!%p181_p9), 64  }
   0xf   : > { %s1222_s8 = scalar_lea.vmem (!%p181_p9), %s1521_s0, %s923_s30  ;;  %s200_s11 = sand.u32 (!%p181_p9), 1, %s1123_s19  }
  0x10   : > { %s1015_s14 = smul.u32 (!%p181_p9), 14, %s200_s11  ;;  %s1479_s30 = scalar_lea.sflag (!%p181_p9), [#allocation3], %s200_s11 }
  0x11   : > { %s968_s16 = smul.u32 (!%p181_p9), 224, %s1191_s22  ;;  %s1138_s7 = smov (!%p181_p9), [#allocation2]  }
  0x12   : > { %s1438_s15 = scalar_lea.vmem (!%p181_p9), [#allocation2], %s1015_s14 }
  0x13   : > { %vm286_vm0 = vcmask 1041409   ;;  %vm289_vm1 = vcmask 1042434   ;;  %vm292_vm2 = vcmask 1043459   ;;  %vm295_vm3 = vcmask 1044484   ;;  %v1061_v1 = vld [vmem:[%s1522_s1 + $0x28] sm:$0xff]   ;;  %v1062_v38 = vld [vmem:[%s1522_s1 + $0x20] sm:$0xff]   ;;  %s1469_s26 = scalar_lea.hbm %s1526_s5, %s968_s16 }
  0x14   : > { %v1133_v0 = vmov 0.0   ;;  %v925_v2 = vld [vmem:[%s1222_s8 + $0x2] sm:$0x1]  ;;  %v926_v3 = vld [vmem:[%s1222_s8 + $0x4] sm:$0x1]  ;;  %vm298_vm4 = vcmask 1045509  }
  0x15   : > { %983 = vmatprep.subr.bf16.mxu0 %v1133_v0  ;;  %999 = vmatprep.subr.bf16.mxu1 %v1133_v0  ;;  %v927_v4 = vld [vmem:[%s1222_s8 + $0x6] sm:$0x1]  ;;  %v928_v5 = vld [vmem:[%s1222_s8 + $0x8] sm:$0x1]  ;;  %v929_v6 = vld [vmem:[%s1222_s8 + $0xa] sm:$0x1]  ;;  %v257_v8 = vpack.c.bf16 %v925_v2, %v925_v2  ;;  %v258_v9 = vpack.c.bf16 %v926_v3, %v926_v3 }
  0x16   : > { %v930_v7 = vld [vmem:[%s1222_s8 + $0xc] sm:$0x1]  ;;  %v259_v10 = vpack.c.bf16 %v927_v4, %v927_v4  ;;  %vm301_vm5 = vcmask 1046534   ;;  %984 = vmatpush3.bf16.msra.mxu0 %v1061_v1  ;;  %1000 = vmatpush3.bf16.msra.mxu1 %v1061_v1  ;;  %v931_v11 = vld [vmem:[%s1222_s8 + $0xe] sm:$0x1]  ;;  %v260_v12 = vpack.c.bf16 %v928_v5, %v928_v5  ;;  %v261_v13 = vpack.c.bf16 %v929_v6, %v929_v6  ;;  %v1063_v49 = vld [vmem:[%s1522_s1 + $0x18] sm:$0xff]  }
  0x17   : > { %v262_v14 = vpack.c.bf16 %v930_v7, %v930_v7  ;;  %v1237_v15 = vld [vmem:[%s1222_s8 + $0x4] sm:$0x1]  ;;  %v1240_v16 = vld [vmem:[%s1222_s8 + $0x6] sm:$0x1]  ;;  %985 = vmatprep.subr.bf16.mxu0 %v1133_v0  ;;  %1001 = vmatprep.subr.bf16.mxu1 %v1133_v0  ;;  %v263_v17 = vpack.c.bf16 %v931_v11, %v931_v11  ;;  %v311_v18 = vunpack.c.l.b16 %v257_v8  ;;  %v312_v19 = vunpack.c.l.b16 %v258_v9  ;;  %v1245_v21 = vld [vmem:[%s1222_s8 + $0x8] sm:$0x1] }
  0x18   : > { %v313_v20 = vunpack.c.l.b16 %v259_v10  ;;  %v314_v22 = vunpack.c.l.b16 %v260_v12  ;;  %v315_v23 = vunpack.c.l.b16 %v261_v13  ;;  %v1248_v25 = vld [vmem:[%s1222_s8 + $0xa] sm:$0x1]  ;;  %v1251_v26 = vld [vmem:[%s1222_s8 + $0xc] sm:$0x1]  ;;  %v264_v27 = vpack.c.bf16 %v1237_v15, %v1237_v15  ;;  %v1256_v31 = vld [vmem:[%s1222_s8 + $0xe] sm:$0x1] }
  0x19   : > { %v316_v24 = vunpack.c.l.b16 %v262_v14  ;;  %v317_v28 = vunpack.c.l.b16 %v263_v17  ;;  %v318_v29 = vrot.slane %v312_v19, 7  ;;  %v1259_v32 = vld [vmem:[%s1222_s8 + $0x10] sm:$0x1]  ;;  %v265_v33 = vpack.c.bf16 %v1240_v16, %v1240_v16  ;;  %v950_v47 = vld [vmem:[%s1222_s8 + $0x3] sm:$0x1]  ;;  %s860_s23 = sshll.u32 %s1438_s15, 4  ;;  %s1458_s23 = int_to_ptr.vmem [resolvable:$true] %s860_s23 }
  0x1a   : > { %v320_v30 = vrot.slane %v313_v20, 6  ;;  %v322_v34 = vrot.slane %v314_v22, 5  ;;  %v324_v35 = vrot.slane %v315_v23, 4  ;;  %v266_v37 = vpack.c.bf16 %v1245_v21, %v1245_v21  ;;  %v951_v48 = vld [vmem:[%s1222_s8 + $0x5] sm:$0x1]  ;;  %986 = vmatpush3.bf16.msra.mxu0 %v1062_v38  ;;  %1002 = vmatpush3.bf16.msra.mxu1 %v1062_v38  ;;  %v1064_v8 = vld [vmem:[%s1522_s1 + $0x10] sm:$0xff]  }
  0x1b   : > { %v326_v36 = vrot.slane %v316_v24, 3  ;;  %v319_v39 = vsel %vm286_vm0, %v318_v29, %v311_v18  ;;  %v328_v40 = vrot.slane %v317_v28, 2  ;;  %v267_v41 = vpack.c.bf16 %v1248_v25, %v1248_v25  ;;  %v952_v54 = vld [vmem:[%s1222_s8 + $0x7] sm:$0x1]  ;;  %v953_v55 = vld [vmem:[%s1222_s8 + $0x9] sm:$0x1]  ;;  %987 = vmatprep.subr.bf16.mxu0 %v1133_v0  ;;  %1003 = vmatprep.subr.bf16.mxu1 %v1133_v0 }
  0x1c   : > { %v268_v42 = vpack.c.bf16 %v1251_v26, %v1251_v26  ;;  %v321_v43 = vsel %vm289_vm1, %v320_v30, %v319_v39  ;;  %v269_v44 = vpack.c.bf16 %v1256_v31, %v1256_v31  ;;  %v270_v45 = vpack.c.bf16 %v1259_v32, %v1259_v32  ;;  %v954_v56 = vld [vmem:[%s1222_s8 + $0xb] sm:$0x1]  ;;  %v955_v61 = vld [vmem:[%s1222_s8 + $0xd] sm:$0x1]  ;;  %v956_v62 = vld [vmem:[%s1222_s8 + $0xf] sm:$0x1] }
  0x1d   : > { %v340_v46 = vunpack.c.l.b16 %v264_v27  ;;  %v323_v50 = vsel %vm292_vm2, %v322_v34, %v321_v43  ;;  %v341_v51 = vunpack.c.l.b16 %v265_v33  ;;  %v342_v52 = vunpack.c.l.b16 %v266_v37  ;;  %v1304_v24 = vld [vmem:[%s1222_s8 + $0x5] sm:$0x1]  ;;  %v1307_v27 = vld [vmem:[%s1222_s8 + $0x7] sm:$0x1]  ;;  %v1311_v34 = vld [vmem:[%s1222_s8 + $0x9] sm:$0x1] }
  0x1e   : > { %v343_v53 = vunpack.c.l.b16 %v267_v41  ;;  %v325_v57 = vsel %vm295_vm3, %v324_v35, %v323_v50  ;;  %v344_v58 = vunpack.c.l.b16 %v268_v42  ;;  %v345_v59 = vunpack.c.l.b16 %v269_v44  ;;  %988 = vmatpush3.bf16.msra.mxu0 %v1063_v49  ;;  %1004 = vmatpush3.bf16.msra.mxu1 %v1063_v49  ;;  %v1065_v35 = vld [vmem:[%s1522_s1 + $0x8] sm:$0xff]  }
  0x1f   : > { %v346_v60 = vunpack.c.l.b16 %v270_v45  ;;  %v327_v63 = vsel %vm298_vm4, %v326_v36, %v325_v57  ;;  %v347_v1 = vrot.slane %v341_v51, 7  ;;  %v349_v2 = vrot.slane %v342_v52, 6  ;;  %989 = vmatprep.subr.bf16.mxu0 %v1133_v0  ;;  %1005 = vmatprep.subr.bf16.mxu1 %v1133_v0  ;;  %v1321_v41 = vld [vmem:[%s1222_s8 + $0xd] sm:$0x1]  ;;  %v1330_v51 = vld [vmem:[%s1222_s8 + $0x11] sm:$0x1] }
  0x20   : > { %v351_v3 = vrot.slane %v343_v53, 5  ;;  %v329_v4 = vsel %vm301_vm5, %v328_v40, %v327_v63  ;;  %v353_v5 = vrot.slane %v344_v58, 4  ;;  %v355_v6 = vrot.slane %v345_v59, 3  ;;  %v1318_v40 = vld [vmem:[%s1222_s8 + $0xb] sm:$0x1] }
  0x21   : > { %v357_v7 = vrot.slane %v346_v60, 2  ;;  %v330_v9 = vpack.c.b16 %v329_v4, %v329_v4  ;;  %v348_v10 = vsel %vm286_vm0, %v347_v1, %v340_v46  ;;  %v598_v11 = vpack.c.bf16 %v950_v47, %v950_v47  ;;  %v1327_v46 = vld [vmem:[%s1222_s8 + $0xf] sm:$0x1] }
  0x22   : > { %v599_v12 = vpack.c.bf16 %v951_v48, %v951_v48  ;;  %v350_v13 = vsel %vm289_vm1, %v349_v2, %v348_v10  ;;  %v600_v14 = vpack.c.bf16 %v952_v54, %v952_v54  ;;  %v601_v17 = vpack.c.bf16 %v953_v55, %v953_v55  ;;  %990 = vmatpush3.bf16.msra.mxu0 %v1064_v8 }
  0x23   : > { %v602_v18 = vpack.c.bf16 %v954_v56, %v954_v56  ;;  %331 = vrot.lane.b32.xlu0 %v330_v9, %s1134_s17  ;;  %v352_v19 = vsel %vm292_vm2, %v351_v3, %v350_v13  ;;  %v603_v20 = vpack.c.bf16 %v955_v61, %v955_v61  ;;  %v604_v22 = vpack.c.bf16 %v956_v62, %v956_v62  ;;  %v1066_v56 = vld [vmem:[%s1522_s1] sm:$0xff]  }
  0x24   : > { %v646_v23 = vunpack.c.l.b16 %v598_v11  ;;  %v354_v28 = vsel %vm295_vm3, %v353_v5, %v352_v19  ;;  %v647_v29 = vunpack.c.l.b16 %v599_v12  ;;  %v648_v30 = vunpack.c.l.b16 %v600_v14  ;;  %1006 = vmatpush3.bf16.msra.mxu1 %v1064_v8  ;;  %991 = vmatprep.subr.bf16.mxu0 %v1133_v0 }
  0x25   : > { %v649_v33 = vunpack.c.l.b16 %v601_v17  ;;  %v356_v36 = vsel %vm298_vm4, %v355_v6, %v354_v28  ;;  %v650_v37 = vunpack.c.l.b16 %v602_v18  ;;  %v651_v38 = vunpack.c.l.b16 %v603_v20  ;;  %1007 = vmatprep.subr.bf16.mxu1 %v1133_v0 }
  0x26   : > { %v652_v39 = vunpack.c.l.b16 %v604_v22  ;;  %v358_v42 = vsel %vm301_vm5, %v357_v7, %v356_v36  ;;  %v653_v43 = vrot.slane %v647_v29, 7  ;;  %v655_v44 = vrot.slane %v648_v30, 6  ;;  %992 = vmatpush3.bf16.msra.mxu0 %v1065_v35 }
  0x27   : > { %v657_v45 = vrot.slane %v649_v33, 5  ;;  %v359_v47 = vpack.c.b16 %v358_v42, %v358_v42  ;;  %v659_v48 = vrot.slane %v650_v37, 4  ;;  %v661_v49 = vrot.slane %v651_v38, 3  ;;  %993 = vmatprep.subr.bf16.mxu0 %v1133_v0  ;;  %v224_v33 = vld [vmem:[%s1222_s8 + $0x2] sm:$0x1] }
  0x28   : > { %v663_v50 = vrot.slane %v652_v39, 2  ;;  %v654_v52 = vsel %vm286_vm0, %v653_v43, %v646_v23  ;;  %v605_v53 = vpack.c.bf16 %v1304_v24, %v1304_v24  ;;  %v606_v54 = vpack.c.bf16 %v1307_v27, %v1307_v27  ;;  %1008 = vmatpush3.bf16.msra.mxu1 %v1065_v35  ;;  %v225_v35 = vld [vmem:[%s1222_s8 + $0x4] sm:$0x1]  ;;  %v223_v37 = vld [vmem:[%s1222_s8] sm:$0x1] }
  0x29   : > { %v607_v55 = vpack.c.bf16 %v1311_v34, %v1311_v34  ;;  %360 = vrot.lane.b32.xlu1 %v359_v47, %s1135_s6  ;;  %v656_v57 = vsel %vm289_vm1, %v655_v44, %v654_v52  ;;  %v608_v58 = vpack.c.bf16 %v1318_v40, %v1318_v40  ;;  %v609_v59 = vpack.c.bf16 %v1321_v41, %v1321_v41  ;;  %v226_v38 = vld [vmem:[%s1222_s8 + $0x6] sm:$0x1]  ;;  %v227_v44 = vld [vmem:[%s1222_s8 + $0x8] sm:$0x1] }
  0x2a   : > { %v610_v60 = vpack.c.bf16 %v1327_v46, %v1327_v46  ;;  %v658_v61 = vsel %vm292_vm2, %v657_v45, %v656_v57  ;;  %v611_v62 = vpack.c.bf16 %v1330_v51, %v1330_v51  ;;  %v675_v63 = vunpack.c.l.b16 %v605_v53  ;;  %1009 = vmatprep.subr.bf16.mxu1 %v1133_v0  ;;  %994 = vmatpush3.bf16.msra.mxu0 %v1066_v56  ;;  %v571_v53 = vld [vmem:[%s1222_s8 + $0x3] sm:$0x1] }
  0x2b   : > { %v676_v1 = vunpack.c.l.b16 %v606_v54  ;;  %v660_v2 = vsel %vm295_vm3, %v659_v48, %v658_v61  ;;  %v677_v3 = vunpack.c.l.b16 %v607_v55  ;;  %v678_v4 = vunpack.c.l.b16 %v608_v58  ;;  %v229_v55 = vld [vmem:[%s1222_s8 + $0xc] sm:$0x1] }
  0x2c   : > { %v679_v5 = vunpack.c.l.b16 %v609_v59  ;;  %v662_v6 = vsel %vm298_vm4, %v661_v49, %v660_v2  ;;  %v680_v7 = vunpack.c.l.b16 %v610_v60  ;;  %v681_v8 = vunpack.c.l.b16 %v611_v62  ;;  %1010 = vmatpush3.bf16.msra.mxu1 %v1066_v56  ;;  %v572_v59 = vld [vmem:[%s1222_s8 + $0x5] sm:$0x1]  ;;  %v570_v62 = vld [vmem:[%s1222_s8 + $0x1] sm:$0x1] }
  0x2d   : > { %v682_v9 = vrot.slane %v676_v1, 7  ;;  %v664_v10 = vsel %vm301_vm5, %v663_v50, %v662_v6  ;;  %v684_v11 = vrot.slane %v677_v3, 6  ;;  %v686_v12 = vrot.slane %v678_v4, 5  ;;  %v228_v50 = vld [vmem:[%s1222_s8 + $0xa] sm:$0x1] }
  0x2e   : > { %v688_v13 = vrot.slane %v679_v5, 4  ;;  %v665_v14 = vpack.c.b16 %v664_v10, %v664_v10  ;;  %v690_v18 = vrot.slane %v680_v7, 3  ;;  %v692_v20 = vrot.slane %v681_v8, 2  ;;  %v573_v3 = vld [vmem:[%s1222_s8 + $0x7] sm:$0x1] }
  0x2f   : > { %v683_v17 = vsel %vm286_vm0, %v682_v9, %v675_v63  ;;  %vm1136_vm6 = vmmov 0   ;;  %v251_v36 = vpack.c.bf16 %v224_v33, %v224_v33  ;;  %v252_v39 = vpack.c.bf16 %v225_v35, %v225_v35  ;;  %v574_v10 = vld [vmem:[%s1222_s8 + $0x9] sm:$0x1] }
  0x30   : > { %v685_v19 = vsel %vm289_vm1, %v684_v11, %v683_v17  ;;  %666 = vrot.lane.b32.xlu0 %v665_v14, %s1134_s17  ;;  %995 = vmatprep.mubr.msk.bf16.mxu0 %vm1136_vm6, %v1133_v0  ;;  %v250_v42 = vpack.c.bf16 %v223_v37, %v223_v37  ;;  %v253_v45 = vpack.c.bf16 %v226_v38, %v226_v38  ;;  %vm362_vm7 = vcmask 261120  }
  0x31   : > { %v687_v22 = vsel %vm292_vm2, %v686_v12, %v685_v19  ;;  %1011 = vmatprep.mubr.msk.bf16.mxu1 %vm1136_vm6, %v1133_v0  ;;  %v279_v43 = vunpack.c.l.b16 %v251_v36  ;;  %v280_v47 = vunpack.c.l.b16 %v252_v39  ;;  %v254_v0 = vpack.c.bf16 %v227_v44, %v227_v44  ;;  %v575_v19 = vld [vmem:[%s1222_s8 + $0xb] sm:$0x1] }
  0x32   : > { %v689_v23 = vsel %vm295_vm3, %v688_v13, %v687_v22  ;;  %v278_v48 = vunpack.c.l.b16 %v250_v42  ;;  %v281_v52 = vunpack.c.l.b16 %v253_v45  ;;  %v255_v56 = vpack.c.bf16 %v228_v50, %v228_v50 }
  0x33   : > { %v691_v28 = vsel %vm298_vm4, %v690_v18, %v689_v23  ;;  %v285_v49 = vrot.slane %v279_v43, 7  ;;  %v288_v54 = vrot.slane %v280_v47, 6  ;;  %v282_v58 = vunpack.c.l.b16 %v254_v0 }
  0x34   : > { %v693_v29 = vsel %vm301_vm5, %v692_v20, %v691_v28  ;;  %v592_v60 = vpack.c.bf16 %v571_v53, %v571_v53  ;;  %v291_v61 = vrot.slane %v281_v52, 5  ;;  %v256_v63 = vpack.c.bf16 %v229_v55, %v229_v55 }
  0x35   : > { %v694_v30 = vpack.c.b16 %v693_v29, %v693_v29  ;;  %v287_v57 = vsel %vm286_vm0, %v285_v49, %v278_v48  ;;  %v283_v2 = vunpack.c.l.b16 %v255_v56  ;;  %v593_v4 = vpack.c.bf16 %v572_v59, %v572_v59 }
  0x36   : > { %v290_v1 = vsel %vm289_vm1, %v288_v54, %v287_v57  ;;  %v294_v5 = vrot.slane %v282_v58, 4  ;;  %v591_v6 = vpack.c.bf16 %v570_v62, %v570_v62  ;;  %v620_v7 = vunpack.c.l.b16 %v592_v60 }
  0x37   : > { %695 = vrot.lane.b32.xlu1 %v694_v30, %s1135_s6  ;;  %v293_v8 = vsel %vm292_vm2, %v291_v61, %v290_v1  ;;  %v284_v9 = vunpack.c.l.b16 %v256_v63  ;;  %v594_v11 = vpack.c.bf16 %v573_v3, %v573_v3  ;;  %v297_v12 = vrot.slane %v283_v2, 3  ;;  %v576_v30 = vld [vmem:[%s1222_s8 + $0xd] sm:$0x1]  ;;  %s1071_s6 = scalar_lea.vmem %s1458_s23, 224  ;;  %s1075_s8 = sshll.u32 %s1138_s7, 4  ;;  %s1076_s8 = int_to_ptr.vmem [resolvable:$false] %s1075_s8 }
  0x38   : > { %v621_v13 = vunpack.c.l.b16 %v593_v4  ;;  %v296_v14 = vsel %vm295_vm3, %v294_v5, %v293_v8  ;;  %v619_v17 = vunpack.c.l.b16 %v591_v6  ;;  %v626_v18 = vrot.slane %v620_v7, 7  ;;  %p1072_p10 = scmp.ne.s32.totalorder %s1458_s23, %s1071_s6  ;;  %s1077_s9 = scalar_lea.vmem %s1076_s8, 448 }
  0x39   : > { %v595_v20 = vpack.c.bf16 %v574_v10, %v574_v10  ;;  %v300_v22 = vrot.slane %v284_v9, 2  ;;  %v622_v23 = vunpack.c.l.b16 %v594_v11  ;;  %v299_v28 = vsel %vm298_vm4, %v297_v12, %v296_v14  ;;  %p1078_p13 = scmp.lt.s32.totalorder %s1458_s23, %s1076_s8  ;;  %p1079_p0 = scmp.lt.s32.totalorder %s1077_s9, %s1071_s6 }
  0x3a   : > { %v628_v29 = vrot.slane %v621_v13, 6  ;;  %v596_v33 = vpack.c.bf16 %v575_v19, %v575_v19  ;;  %v627_v35 = vsel %vm286_vm0, %v626_v18, %v619_v17  ;;  %v597_v39 = vpack.c.bf16 %v576_v30, %v576_v30  ;;  %p1073_p11 = pnand %p1072_p10, %p1208_p5 }
  0x3b   : > { %v623_v36 = vunpack.c.l.b16 %v595_v20  ;;  %v302_v37 = vsel %vm301_vm5, %v300_v22, %v299_v28  ;;  %v630_v38 = vrot.slane %v622_v23, 5  ;;  %vm366_vm8 = vcmask 523264   ;;  %p1080_p1 = por %p1079_p0, %p1078_p13 }
  0x3c   : > { %v629_v42 = vsel %vm289_vm1, %v628_v29, %v627_v35  ;;  %v624_v43 = vunpack.c.l.b16 %v596_v33  ;;  %v303_v44 = vpack.c.b16 %v302_v37, %v302_v37  ;;  %v625_v49 = vunpack.c.l.b16 %v597_v39  ;;  %p1074_p12 = pneg %p1073_p11 }
  0x3d   : > { %v632_v45 = vrot.slane %v623_v36, 4  ;;  %v631_v48 = vsel %vm292_vm2, %v630_v38, %v629_v42  ;;  %vm411_vm9 = vcmask 785408   ;;  %v462_v63 = vrot.slane %v1240_v16, 7  ;;  %v940_v16 = vld [vmem:[%s1523_s2] ss:$0 sm:$0xff] }
  0x3e   : > { %v634_v50 = vrot.slane %v624_v43, 3  ;;  %v636_v54 = vrot.slane %v625_v49, 2  ;;  %v464_v1 = vrot.slane %v1245_v21, 6  ;;  %v466_v3 = vrot.slane %v1248_v25, 5  ;;  %p1081_p2 = pnand %p1080_p1, %p1074_p12 }
  0x3f   : > { %v633_v52 = vsel %vm295_vm3, %v632_v45, %v631_v48  ;;  %v463_v2 = vsel %vm286_vm0, %v462_v63, %v1237_v15  ;;  %v468_v5 = vrot.slane %v1251_v26, 4  ;;  %v470_v7 = vrot.slane %v1256_v31, 3 }
  0x40   : > { %v635_v56 = vsel %vm298_vm4, %v634_v50, %v633_v52  ;;  %v465_v4 = vsel %vm289_vm1, %v464_v1, %v463_v2  ;;  %v752_v9 = vrot.slane %v1307_v27, 7  ;;  %v472_v15 = vrot.slane %v1259_v32, 2  ;;  %v948_v2 = vld [vmem:[%s1524_s3] ss:$0 sm:$0xff] }
  0x41   : > { %v637_v57 = vsel %vm301_vm5, %v636_v54, %v635_v56  ;;  %v467_v6 = vsel %vm292_vm2, %v466_v3, %v465_v4  ;;  %v754_v25 = vrot.slane %v1311_v34, 6  ;;  %v756_v27 = vrot.slane %v1318_v40, 5  ;;  %v949_v4 = vld [vmem:[%s1525_s4] ss:$0 sm:$0xff] }
  0x42   : > { %v638_v58 = vpack.c.b16 %v637_v57, %v637_v57  ;;  %v469_v8 = vsel %vm295_vm3, %v468_v5, %v467_v6  ;;  %v753_v26 = vsel %vm286_vm0, %v752_v9, %v1304_v24  ;;  %vm476_vm10 = vcmask 260096  }
  0x43   : > { %v471_v21 = vsel %vm298_vm4, %v470_v7, %v469_v8  ;;  %v755_v14 = vsel %vm289_vm1, %v754_v25, %v753_v26  ;;  %v758_v18 = vrot.slane %v1321_v41, 4  ;;  %v760_v22 = vrot.slane %v1327_v46, 3 }
  0x44   : > { %v473_v31 = vsel %vm301_vm5, %v472_v15, %v471_v21  ;;  %v757_v34 = vsel %vm292_vm2, %v756_v27, %v755_v14  ;;  %v762_v40 = vrot.slane %v1330_v51, 2  ;;  %v1137_v57 = vmov 1966171168  }
  0x45   : > { %v759_v23 = vsel %vm295_vm3, %v758_v18, %v757_v34  ;;  %vm562_vm11 = vcmask 253952  }
  0x46   : > { %v761_v29 = vsel %vm298_vm4, %v760_v22, %v759_v23 }
  0x47   : > { %v763_v33 = vsel %vm301_vm5, %v762_v40, %v761_v29 }
  0x95   : > { %v332_v47 = vpop.permute.xlu0 %331 }
  0x96   : > { %v365_v0 = vsel %vm362_vm7, %v303_v44, %v332_v47 }
  0x9b   : > { %v361_v53 = vpop.permute.xlu1 %360 }
  0x9c   : > { %v368_v55 = vsel %vm366_vm8, %v365_v0, %v361_v53 }
  0x9d   : > { %996 = vmatmul.mubr.msk.bf16.vlgmr.msra.gmra.mxu0 %vm411_vm9, %v368_v55 }
  0xa2   : > { %v667_v59 = vpop.permute.xlu0 %666 }
  0xa3   : > { %v699_v60 = vsel %vm362_vm7, %v638_v58, %v667_v59  ;;  %v509_v58 = vunpack.c.l.s4 %v1137_v57  ;;  %v511_v59 = vlaneseq }
  0xa5   : > { %v512_v63 = vshrl.u32 %v511_v59, 7 }
  0xa9   : > { %v696_v61 = vpop.permute.xlu1 %695 }
  0xaa   : > { %v701_v62 = vsel %vm366_vm8, %v699_v60, %v696_v61 }
  0xab   : > { %1012 = vmatmul.mubr.msk.bf16.vlgmr.msra.gmra.mxu1 %vm411_vm9, %v701_v62  ;;  %v510_v62 = vunpack.c.0.s8 %v509_v58 }
  0xad   : > { %v513_v5 = vsub.s32 %v510_v62, %v512_v63 }
 0x15d   : > { %v448_v10 = vpop.f32.mrf.mxu0 }
 0x15e   : > { %v449_v11 = vadd.f32 %v940_v16, %v448_v10 }
 0x15f   : > { %v997_v12 = vpop.f32.mrf.mxu0 }
 0x160   : > { %v454_v13 = vmax.f32 %v449_v11, 0.0 }
 0x161   : > { %v451_v17 = vpop.f32.mrf.mxu0 }
 0x162   : > { %v475_v32 = vadd.f32 %v473_v31, %v454_v13 }
 0x163   : > { %v998_v19 = vpop.f32.mrf.mxu0 }
 0x164   : > { %v477_v20 = vsel %vm476_vm10, %v475_v32, 0.0  ;;  %v480_v24 = vmul.f32 %v475_v32, %v475_v32 }
 0x165   : > { %478 = vadd.xlane.f32.xlu0 %v477_v20 }
 0x166   : > { %v481_v28 = vsel %vm476_vm10, %v480_v24, 0.0 }
 0x169   : > { %482 = vadd.xlane.f32.xlu0 %v481_v28 }
 0x16b   : > { %v738_v30 = vpop.f32.mrf.mxu1 }
 0x16c   : > { %v739_v41 = vadd.f32 %v940_v16, %v738_v30 }
 0x16d   : > { %v1013_v35 = vpop.f32.mrf.mxu1 }
 0x16e   : > { %v744_v36 = vmax.f32 %v739_v41, 0.0 }
 0x16f   : > { %v741_v37 = vpop.f32.mrf.mxu1 }
 0x170   : > { %v765_v38 = vadd.f32 %v763_v33, %v744_v36 }
 0x171   : > { %v1014_v39 = vpop.f32.mrf.mxu1 }
 0x172   : > { %v766_v46 = vsel %vm476_vm10, %v765_v38, 0.0  ;;  %v769_v42 = vmul.f32 %v765_v38, %v765_v38 }
 0x173   : > { %767 = vadd.xlane.f32.xlu1 %v766_v46 }
 0x174   : > { %v770_v51 = vsel %vm476_vm10, %v769_v42, 0.0 }
 0x175   : > { %771 = vadd.xlane.f32.xlu0 %v770_v51 }
 0x1ee   : > { %v479_v43 = vpop.xlane.xlu0 %478 }
 0x1ef   : > { %v484_v44 = vmul.f32 0.03125, %v479_v43 }
 0x1f1   : > { %v486_v47 = vmul.f32 %v484_v44, %v484_v44  ;;  %v488_v61 = vsub.f32 %v475_v32, %v484_v44 }
 0x1f2   : > { %v483_v45 = vpop.xlane.xlu0 %482 }
 0x1f3   : > { %v485_v48 = vmul.f32 0.03125, %v483_v45 }
 0x1f5   : > { %v487_v49 = vsub.f32 %v485_v48, %v486_v47 }
 0x1f7   : > { %v489_v50 = vadd.f32 1e-05, %v487_v49 }
 0x1f9   : > { %1067 = vrsqrt.f32 %v489_v50 }
 0x1fc   : > { %v768_v0 = vpop.xlane.xlu1 %767 }
 0x1fd   : > { %v773_v52 = vmul.f32 0.03125, %v768_v0 }
 0x1fe   : > { %v772_v53 = vpop.xlane.xlu0 %771 }
 0x1ff   : > { %v775_v54 = vmul.f32 %v773_v52, %v773_v52  ;;  %v774_v55 = vmul.f32 0.03125, %v772_v53  ;;  %v777_v25 = vsub.f32 %v765_v38, %v773_v52 }
 0x201   : > { %v776_v56 = vsub.f32 %v774_v55, %v775_v54 }
 0x203   : > { %v778_v60 = vadd.f32 1e-05, %v776_v56 }
 0x205   : > { %1069 = vrsqrt.f32 %v778_v60 }
 0x206   : > { %v1068_v1 = vpop.eup %1067 }
 0x207   : > { %v491_v3 = vmul.f32 %v1068_v1, %v488_v61 }
 0x209   : > { %v498_v6 = vmul.f32 %v948_v2, %v491_v3 }
 0x20b   : > { %v505_v7 = vadd.f32 %v949_v4, %v498_v6 }
 0x20d   : > { %v507_v8 = vcombine.high %v505_v7, %v505_v7  ;;  %v514_v9 = vrot.slane %v505_v7, %v513_v5 }
 0x20f   : > { %v521_v16 = vrot.slane %v507_v8, %v513_v5  ;;  %v522_v15 = vcombine.high %v514_v9, %v514_v9  ;;  %v530_v21 = vrot.slane %v514_v9, %v513_v5 }
 0x211   : > { %v523_v26 = vcombine.high %v521_v16, %v521_v16  ;;  %v537_v11 = vrot.slane %v521_v16, %v513_v5  ;;  %v544_v31 = vrot.slane %v522_v15, %v513_v5  ;;  %v552_v12 = vcombine.high %v530_v21, %v530_v21  ;;  %563 = vst.msk [vmem:[%s1438_s15] sm:$0x1] %vm562_vm11, %v530_v21 }
 0x212   : > { %v1070_v10 = vpop.eup %1069 }
 0x213   : > { %v780_v27 = vmul.f32 %v1070_v10, %v777_v25  ;;  %v551_v13 = vrot.slane %v523_v26, %v513_v5  ;;  %v553_v14 = vcombine.high %v537_v11, %v537_v11  ;;  %v554_v17 = vcombine.high %v544_v31, %v544_v31  ;;  %564 = vst.msk [vmem:[%s1438_s15 + $0x2] sm:$0x1] %vm562_vm11, %v544_v31 }
 0x214   : > { %565 = vst.msk [vmem:[%s1438_s15 + $0x4] sm:$0x1] %vm562_vm11, %v552_v12  ;;  %567 = vst.msk [vmem:[%s1438_s15 + $0x8] sm:$0x1] %vm562_vm11, %v537_v11 }
 0x215   : > { %v781_v32 = vmul.f32 %v948_v2, %v780_v27  ;;  %566 = vst.msk [vmem:[%s1438_s15 + $0x6] sm:$0x1] %vm562_vm11, %v554_v17  ;;  %568 = vst.msk [vmem:[%s1438_s15 + $0xa] sm:$0x1] %vm562_vm11, %v551_v13 }
 0x216   : > { %569 = vst.msk [vmem:[%s1438_s15 + $0xc] sm:$0x1] %vm562_vm11, %v553_v14 }
 0x217   : > { %v782_v18 = vadd.f32 %v949_v4, %v781_v32 }
 0x219   : > { %v784_v34 = vcombine.high %v782_v18, %v782_v18  ;;  %v791_v19 = vrot.slane %v782_v18, %v513_v5 }
 0x21b   : > { %v798_v20 = vrot.slane %v784_v34, %v513_v5  ;;  %v799_v24 = vcombine.high %v791_v19, %v791_v19  ;;  %v807_v22 = vrot.slane %v791_v19, %v513_v5 }
 0x21d   : > { %v800_v23 = vcombine.high %v798_v20, %v798_v20  ;;  %v814_v40 = vrot.slane %v798_v20, %v513_v5  ;;  %v821_v28 = vrot.slane %v799_v24, %v513_v5  ;;  %v829_v29 = vcombine.high %v807_v22, %v807_v22  ;;  %839 = vst.msk [vmem:[%s1438_s15 + $0x1] sm:$0x1] %vm562_vm11, %v807_v22 }
 0x21f   : > { %v828_v30 = vrot.slane %v800_v23, %v513_v5  ;;  %v830_v41 = vcombine.high %v814_v40, %v814_v40  ;;  %v831_v33 = vcombine.high %v821_v28, %v821_v28  ;;  %840 = vst.msk [vmem:[%s1438_s15 + $0x3] sm:$0x1] %vm562_vm11, %v821_v28  ;;  %841 = vst.msk [vmem:[%s1438_s15 + $0x5] sm:$0x1] %vm562_vm11, %v829_v29 }
 0x220   : > { %843 = vst.msk [vmem:[%s1438_s15 + $0x9] sm:$0x1] %vm562_vm11, %v814_v40 }
 0x221   : > { %842 = vst.msk [vmem:[%s1438_s15 + $0x7] sm:$0x1] %vm562_vm11, %v831_v33  ;;  %844 = vst.msk [vmem:[%s1438_s15 + $0xb] sm:$0x1] %vm562_vm11, %v828_v30 }
 0x222   : > { %845 = vst.msk [vmem:[%s1438_s15 + $0xd] sm:$0x1] %vm562_vm11, %v830_v41 }
 0x223   : > { %1084 = shalt.err (!%p1081_p2)
}
 0x224   : > { %s1085_s10 = scalar_lea.hbm %s1469_s26, 224  ;;  %s1089_s13 = scalar_lea.hbm %s1526_s5, 448 }
 0x225   : > { %p1086_p3 = scmp.ne.s32.totalorder %s1469_s26, %s1085_s10  ;;  %p1090_p8 = scmp.lt.s32.totalorder %s1469_s26, %s1526_s5 }
 0x226   : > { %p1091_p9 = scmp.lt.s32.totalorder %s1089_s13, %s1085_s10 }
 0x227   : > { %p1087_p4 = pnand %p1086_p3, %p1208_p5 }
 0x228   : > { %p1092_p10 = por %p1091_p9, %p1090_p8 }
 0x229   : > { %p1088_p7 = pneg %p1087_p4 }
 0x22b   : > { %p1093_p11 = pnand %p1092_p10, %p1088_p7 }
 0x22d   : > { %1096 = shalt.err (!%p1093_p11)
}
 0x22e   : > { %s1139_s16 = smov 2  }
 0x22f   : > { %1016 = dma.vmem_to_hbm [thread:$0]  (%p1208_p5), %s1458_s23, 224, %s1469_s26, %s1479_s30, %s1134_s17, %s1134_s17, %s1139_s16  }
 0x230 PF: > { %p1022_p12 = scmp.ge.s32.totalorder %s1131_s21, 2  ;;  %s875_s22 = sand.u32 1, %s1119_s18  }
 0x231   : > { %s876_s25 = scalar_lea.sflag [#allocation3], %s875_s22 }
 0x232   : > { %p1019_p13 = pnand %p1022_p12, %p1212_p6 }
 0x234   : > { %p1020_p0 = pneg %p1019_p13 }
 0x236   : > { %1114 = dma.done.wait (%p1020_p0), %s876_s25, 224  }
 0x237   : > { %1116 = vsyncadd (%p1020_p0), %s876_s25, 4294967072  ;;  %p15_p1 = scmp.ge.s32.totalorder %s1195_s24, 4   ;;  %s1529_s18 = smov %s1123_s19 }
 0x238   : > { %s1530_s19 = smov %s1127_s20  ;;  %s1531_s20 = smov %s1206_s27 }
 0x239   : > { %s1532_s21 = smov %s1195_s24  ;;  %17 = sbr.rel (!%p15_p1) target bundleno = 3 (0x3), region = 75 }
 0x23e   :  { %881 = vsyncpa [#allocation3], 1 }
 0x23f   :  { %883 = vsyncpa [#allocation3 + $0x1], 1 }

</bundles_post_ra>
